<compile_context>
chip_gen: v7x
topology: tpu7x:2x2x1
jax: 0.10.0
libtpu: 0.0.40
codegen_flags: <defaults>
</compile_context>

<pallas_src>
import jax
import jax.numpy as jnp
from jax import lax
from jax.experimental import pallas as pl
from jax.experimental.pallas import tpu as pltpu

N_BITS = 8
N_LEVELS = 2 ** N_BITS          # asymmetric -> 256 levels
QMAX = float(N_LEVELS - 1)      # clamp(x_int, 0, 255)


# ----------------------------- Pallas kernel -------------------------------
def qconv_gemm_kernel(p_ref, w_ref, comb_ref, b_ref, o_ref):
    """Pure bf16 integer-code GEMM on the MXU.  The f32 output block is resident
    across the K grid axis, so it doubles as the accumulator; the per-OC dequant
    scale (delta_act*delta_w) and the bias are applied once in the epilogue."""
    kk = pl.program_id(2)

    @pl.when(kk == 0)
    def _():
        o_ref[...] = jnp.zeros_like(o_ref)

    o_ref[...] += jnp.dot(p_ref[...], w_ref[...],
                          preferred_element_type=jnp.float32)

    @pl.when(kk == pl.num_programs(2) - 1)
    def _():
        o_ref[...] = o_ref[...] * comb_ref[...] + b_ref[...]


# ------------------------------- JAX glue -----------------------------------
def _round_up(v, m):
    return ((v + m - 1) // m) * m


def _pick_tile(dim_pad, cap):
    """dim_pad is a multiple of 128; return the largest multiple of 128 that is
    <= cap and divides dim_pad (so no dead tiles / zero columns are processed)."""
    q = dim_pad // 128
    d = max(1, min(cap, dim_pad) // 128)
    while d > 1 and q % d != 0:
        d -= 1
    return d * 128


def _act_scale_init(x):
    """UniformAffineQuantizer.init_quantization_scale, channel_wise=False, 'max':
       delta from raw (max-min); zero point from x_min clamped to <= 0 (as in torch)."""
    x_min = jnp.minimum(x.min(), 0.0)
    delta = (x.max() - x.min()) / (N_LEVELS - 1)
    delta = jnp.maximum(delta, 1e-8)
    zp = jnp.round(-x_min / delta)
    return delta.astype(jnp.float32), zp.astype(jnp.float32)


def _weight_scale_init_channelwise(w):
    """Per-output-channel 'max' init (channel_wise=True path of the quantizer)."""
    oc = w.shape[0]
    wf = w.reshape(oc, -1)
    w_min = jnp.minimum(wf.min(axis=1), 0.0)
    delta = (wf.max(axis=1) - wf.min(axis=1)) / (N_LEVELS - 1)
    delta = jnp.maximum(delta, 1e-8)
    zp = jnp.round(-w_min / delta)
    return delta.astype(jnp.float32), zp.astype(jnp.float32)


def _im2col(x, kh, kw, stride, pad):
    """NCHW -> (N*OH*OW, C*KH*KW); patch features ordered (C, KH, KW) like OIHW weight.
    Conv zero-padding is applied here; since x already holds centered codes, the
    padded zeros correspond to dequant value 0.0 (matching torch's conv padding)."""
    n, c, h, w = x.shape
    xp = jnp.pad(x, ((0, 0), (0, 0), (pad, pad), (pad, pad)))
    oh = (h + 2 * pad - kh) // stride + 1
    ow = (w + 2 * pad - kw) // stride + 1
    cols = []
    for i in range(kh):
        for j in range(kw):
            cols.append(xp[:, :, i:i + oh * stride:stride, j:j + ow * stride:stride])
    patches = jnp.stack(cols, axis=0).reshape(kh, kw, n, c, oh, ow)
    patches = patches.transpose(2, 4, 5, 3, 0, 1)           # (N, OH, OW, C, KH, KW)
    return patches.reshape(n * oh * ow, c * kh * kw), oh, ow


def quant_module_one_forward(x, weight, bias, *, stride=1, pad=1,
                             tm=512, tn=256, tk=512):
    """QuantModule_one.forward with weight+act quant on, split=0."""
    nb, c, h, w = x.shape
    oc, _, kh, kw = weight.shape
    if bias is None:
        bias = jnp.zeros((oc,), jnp.float32)

    # one-time quantizer init (done lazily on first forward in PyTorch)
    act_d, act_zp = _act_scale_init(x)
    wd, wzp = _weight_scale_init_channelwise(weight)

    # ---- activation fake-quant hoisted out of the kernel (once, pre-im2col) ----
    # centered integer codes, |code| <= 255 -> exact in bf16
    x_codes = jnp.clip(jnp.round(x / act_d) + act_zp, 0.0, QMAX)
    x_cent = (x_codes - act_zp).astype(jnp.bfloat16)

    # ---- weight fake-quant hoisted out of the kernel (once) ----
    w2d = weight.reshape(oc, -1).T                           # (K, OC)
    w_codes = jnp.clip(jnp.round(w2d / wd[None, :]) + wzp[None, :], 0.0, QMAX)
    w_cent = (w_codes - wzp[None, :]).astype(jnp.bfloat16)   # exact integer codes

    patches, oh, ow = _im2col(x_cent, kh, kw, stride, pad)   # (M, K) bf16 codes
    m, k = patches.shape

    # ---- lane-dense / MXU-friendly padding & tile selection ----
    k_pad = _round_up(k, 128)
    tk = _pick_tile(k_pad, tk)
    oc_pad = _round_up(oc, 128)
    tn = _pick_tile(oc_pad, tn)
    tm = min(tm, _round_up(m, 16))
    m_pad = _round_up(m, tm)

    patches_p = jnp.pad(patches, ((0, m_pad - m), (0, k_pad - k)))     # bf16
    w_p = jnp.pad(w_cent, ((0, k_pad - k), (0, oc_pad - oc)))          # bf16
    comb = (act_d * wd).reshape(1, oc).astype(jnp.float32)             # d_a * d_w
    comb_p = jnp.pad(comb, ((0, 0), (0, oc_pad - oc)))
    bias_p = jnp.pad(bias.reshape(1, oc).astype(jnp.float32),
                     ((0, 0), (0, oc_pad - oc)))

    grid = (m_pad // tm, oc_pad // tn, k_pad // tk)

    out2d = pl.pallas_call(
        qconv_gemm_kernel,
        out_shape=jax.ShapeDtypeStruct((m_pad, oc_pad), jnp.float32),
        grid=grid,
        in_specs=[
            pl.BlockSpec((tm, tk), lambda i, j, kk: (i, kk)),   # bf16 patch codes
            pl.BlockSpec((tk, tn), lambda i, j, kk: (kk, j)),   # bf16 weight codes
            pl.BlockSpec((1, tn), lambda i, j, kk: (0, j)),     # d_a*d_w per OC
            pl.BlockSpec((1, tn), lambda i, j, kk: (0, j)),     # bias
        ],
        out_specs=pl.BlockSpec((tm, tn), lambda i, j, kk: (i, j)),
        compiler_params=pltpu.CompilerParams(
            dimension_semantics=("parallel", "parallel", "arbitrary")),
    )(patches_p, w_p, comb_p, bias_p)

    # slice padding away, (M, OC) -> NCHW
    out2d = out2d[:m, :oc]
    return out2d.reshape(nb, oh, ow, oc).transpose(0, 3, 1, 2)


# ------------------------------- reference ----------------------------------
def _reference(x, weight, bias, stride=1, pad=1):
    act_d, act_zp = _act_scale_init(x)
    wd, wzp = _weight_scale_init_channelwise(weight)

    x_q = (jnp.clip(jnp.round(x / act_d) + act_zp, 0.0, QMAX) - act_zp) * act_d

    wd4 = wd.reshape(-1, 1, 1, 1)
    wzp4 = wzp.reshape(-1, 1, 1, 1)
    w_q = (jnp.clip(jnp.round(weight / wd4) + wzp4, 0.0, QMAX) - wzp4) * wd4

    out = lax.conv_general_dilated(
        x_q, w_q, window_strides=(stride, stride),
        padding=((pad, pad), (pad, pad)),
        dimension_numbers=("NCHW", "OIHW", "NCHW"))
    return out + bias.reshape(1, -1, 1, 1)


if __name__ == "__main__":
    key = jax.random.PRNGKey(0)
    kx, kw, kb = jax.random.split(key, 3)

    # small Conv2d: in_ch=4, out_ch=8, kernel 3x3, stride 1, pad 1, bias
    x = jax.random.normal(kx, (2, 4, 16, 16), dtype=jnp.float32)      # NCHW
    weight = jax.random.normal(kw, (8, 4, 3, 3), dtype=jnp.float32)   # OIHW
    bias = jax.random.normal(kb, (8,), dtype=jnp.float32)

    out = quant_module_one_forward(x, weight, bias)
    out = jax.block_until_ready(out)

    ref = jax.block_until_ready(_reference(x, weight, bias))
    assert out.shape == (2, 8, 16, 16), out.shape
    assert jnp.allclose(out, ref, atol=1e-3, rtol=1e-3), "mismatch vs reference"

    print("KERNEL_OK")
</pallas_src>

<mosaic_0001>
module attributes {stable_mosaic.version = 11 : i64} {
  func.func @qconv_gemm_kernel(%arg0: i32, %arg1: i32, %arg2: i32, %arg3: memref<512x128xbf16, #tpu.memory_space<vmem>>, %arg4: memref<128x128xbf16, #tpu.memory_space<vmem>>, %arg5: memref<1x128xf32, #tpu.memory_space<vmem>>, %arg6: memref<1x128xf32, #tpu.memory_space<vmem>>, %arg7: memref<512x128xf32, #tpu.memory_space<vmem>>) attributes {dimension_semantics = [#tpu.dimension_semantics<parallel>, #tpu.dimension_semantics<parallel>, #tpu.dimension_semantics<arbitrary>], iteration_bounds = array<i64: 1, 1, 1>, scalar_prefetch = 0 : i64, scratch_operands = 0 : i64, tpu.core_type = #tpu.core_type<tc>, window_params = [{transform_indices = @transform_0, window_bounds = array<i64: 512, 128>}, {transform_indices = @transform_1, window_bounds = array<i64: 128, 128>}, {transform_indices = @transform_2, window_bounds = array<i64: 1, 128>}, {transform_indices = @transform_3, window_bounds = array<i64: 1, 128>}, {transform_indices = @transform_4, window_bounds = array<i64: 512, 128>}]} {
    %c0_i32 = arith.constant 0 : i32
    %0 = arith.cmpi eq, %arg2, %c0_i32 : i32
    %1 = arith.extui %0 : i1 to i32
    %c0_i32_0 = arith.constant 0 : i32
    %2 = arith.cmpi ne, %1, %c0_i32_0 : i32
    scf.if %2 {
      %cst_10 = arith.constant 0.000000e+00 : f32
      %12 = vector.broadcast %cst_10 : f32 to vector<512x128xf32>
      %c0_11 = arith.constant 0 : index
      %c0_12 = arith.constant 0 : index
      %13 = vector.load %arg7[%c0_11, %c0_12] : memref<512x128xf32, #tpu.memory_space<vmem>>, vector<512x128xf32>
      tpu.vector_store %arg7[%c0_11, %c0_12], %12 {strides = array<i32>} : memref<512x128xf32, #tpu.memory_space<vmem>>, vector<512x128xf32>,
    } else {
    }
    %c0 = arith.constant 0 : index
    %c0_1 = arith.constant 0 : index
    %3 = vector.load %arg7[%c0, %c0_1] : memref<512x128xf32, #tpu.memory_space<vmem>>, vector<512x128xf32>
    %c0_2 = arith.constant 0 : index
    %c0_3 = arith.constant 0 : index
    %4 = vector.load %arg3[%c0_2, %c0_3] : memref<512x128xbf16, #tpu.memory_space<vmem>>, vector<512x128xbf16>
    %c0_4 = arith.constant 0 : index
    %c0_5 = arith.constant 0 : index
    %5 = vector.load %arg4[%c0_4, %c0_5] : memref<128x128xbf16, #tpu.memory_space<vmem>>, vector<128x128xbf16>
    %cst = arith.constant dense<0.000000e+00> : vector<512x128xf32>
    %6 = tpu.matmul %4, %5, %cst {dimension_numbers = #tpu.dot_dimension_numbers<[1], [0], [0], [1], [0, 0, 1, 1], [], []>} : vector<512x128xbf16>, vector<128x128xbf16>, vector<512x128xf32> -> vector<512x128xf32>
    %7 = arith.addf %3, %6 : vector<512x128xf32>
    %c0_6 = arith.constant 0 : index
    %c0_7 = arith.constant 0 : index
    %8 = vector.load %arg7[%c0_6, %c0_7] : memref<512x128xf32, #tpu.memory_space<vmem>>, vector<512x128xf32>
    tpu.vector_store %arg7[%c0_6, %c0_7], %7 {strides = array<i32>} : memref<512x128xf32, #tpu.memory_space<vmem>>, vector<512x128xf32>,
    %c0_i32_8 = arith.constant 0 : i32
    %9 = arith.cmpi eq, %arg2, %c0_i32_8 : i32
    %10 = arith.extui %9 : i1 to i32
    %c0_i32_9 = arith.constant 0 : i32
    %11 = arith.cmpi ne, %10, %c0_i32_9 : i32
    scf.if %11 {
      %c0_10 = arith.constant 0 : index
      %c0_11 = arith.constant 0 : index
      %12 = vector.load %arg7[%c0_10, %c0_11] : memref<512x128xf32, #tpu.memory_space<vmem>>, vector<512x128xf32>
      %c0_12 = arith.constant 0 : index
      %c0_13 = arith.constant 0 : index
      %13 = vector.load %arg5[%c0_12, %c0_13] : memref<1x128xf32, #tpu.memory_space<vmem>>, vector<1x128xf32>
      %14 = vector.broadcast %13 : vector<1x128xf32> to vector<512x128xf32>
      %15 = arith.mulf %12, %14 : vector<512x128xf32>
      %c0_14 = arith.constant 0 : index
      %c0_15 = arith.constant 0 : index
      %16 = vector.load %arg6[%c0_14, %c0_15] : memref<1x128xf32, #tpu.memory_space<vmem>>, vector<1x128xf32>
      %17 = vector.broadcast %16 : vector<1x128xf32> to vector<512x128xf32>
      %18 = arith.addf %15, %17 : vector<512x128xf32>
      %c0_16 = arith.constant 0 : index
      %c0_17 = arith.constant 0 : index
      %19 = vector.load %arg7[%c0_16, %c0_17] : memref<512x128xf32, #tpu.memory_space<vmem>>, vector<512x128xf32>
      tpu.vector_store %arg7[%c0_16, %c0_17], %18 {strides = array<i32>} : memref<512x128xf32, #tpu.memory_space<vmem>>, vector<512x128xf32>,
    } else {
    }
    return
  }
  func.func @transform_0(%arg0: i32, %arg1: i32, %arg2: i32) -> (i32, i32) {
    %c0_i32 = arith.constant 0 : i32
    return %arg0, %arg2 : i32, i32
  }
  func.func @transform_1(%arg0: i32, %arg1: i32, %arg2: i32) -> (i32, i32) {
    %c0_i32 = arith.constant 0 : i32
    return %arg2, %arg1 : i32, i32
  }
  func.func @transform_2(%arg0: i32, %arg1: i32, %arg2: i32) -> (i32, i32) {
    %c0_i32 = arith.constant 0 : i32
    %c0_i32_0 = arith.constant 0 : i32
    return %c0_i32, %arg1 : i32, i32
  }
  func.func @transform_3(%arg0: i32, %arg1: i32, %arg2: i32) -> (i32, i32) {
    %c0_i32 = arith.constant 0 : i32
    %c0_i32_0 = arith.constant 0 : i32
    return %c0_i32, %arg1 : i32, i32
  }
  func.func @transform_4(%arg0: i32, %arg1: i32, %arg2: i32) -> (i32, i32) {
    %c0_i32 = arith.constant 0 : i32
    return %arg0, %arg1 : i32, i32
  }
}

</mosaic_0001>

<bundles_post_ra>
// kernel: tpu_custom_call.1
= control target key start
LH: loop header
LB: loop body
LE: loop exit
PB: predicated region body
PF: predicated region fallthrough
CT: control target
= control target key end

     0   :  { %9 = vsyncpa [#allocation3], 0  ;;  %s1711_s0 = inlined_call_operand.hbm [shape: bf16[512,128], index: 0, kind: input, shape index: {}]   ;;  %s1712_s1 = inlined_call_operand.hbm [shape: bf16[128,128], index: 1, kind: input, shape index: {}]   ;;  %s1713_s2 = inlined_call_operand.vmem [shape: f32[1,128], index: 2, kind: input, shape index: {}]   ;;  %s1714_s3 = inlined_call_operand.vmem [shape: f32[1,128], index: 3, kind: input, shape index: {}]   ;;  %s1715_s4 = inlined_call_operand.hbm [shape: f32[512,128], index: 4, kind: output, shape index: {}]  }
   0x1   :  { %10 = vsyncpa [#allocation6], 0 }
   0x2   :  { %11 = vsyncpa [#allocation4], 0  ;;  %s1505_s15 = smov [#allocation2]   ;;  %s1433_s19 = scalar_lea.hbm %s1711_s0, 4096 }
   0x3   :  { %s17_s16 = sshll.u32 %s1505_s15, 4  ;;  %p1434_p0 = scmp.ne.s32.totalorder %s1711_s0, %s1433_s19  ;;  %s18_s16 = int_to_ptr.vmem [resolvable:$true] %s17_s16 }
   0x4   :  { %p1437_p1 = scmp.lt.u32.totalorder %s1433_s19, %s1711_s0 }
   0x6   :  { %p1439_p2 = pnand %p1437_p1, %p1434_p0 }
   0x8   :  { %1442 = shalt.err (!%p1439_p2)
}
   0x9   :  { %s1443_s24 = scalar_lea.vmem %s18_s16, 4096  ;;  %p1448_p4 = scmp.lt.s32.totalorder %s18_s16, %s18_s16 }
   0xa   :  { %p1444_p3 = scmp.ne.s32.totalorder %s18_s16, %s1443_s24  ;;  %p1449_p5 = scmp.lt.s32.totalorder %s1443_s24, %s1443_s24 }
   0xc   :  { %p1450_p6 = por %p1449_p5, %p1448_p4 }
   0xe   :  { %p1451_p7 = pnand %p1450_p6, %p1444_p3 }
  0x10   :  { %1454 = shalt.err (!%p1451_p7)
}
  0x11   :  { %s1506_s25 = smov 64   ;;  %s1507_s26 = smov 4  }
  0x12   :  { %23 = dma.hbm_to_vmem [thread:$0]  %s1711_s0, 4096, %s18_s16, [#allocation3], %s1506_s25, %s1506_s25, %s1507_s26  }
  0x13   :  { %s1508_s29 = smov [#allocation5]   ;;  %s1455_s7 = scalar_lea.hbm %s1712_s1, 1024 }
  0x14   :  { %s29_s30 = sshll.u32 %s1508_s29, 4  ;;  %p1456_p8 = scmp.ne.s32.totalorder %s1712_s1, %s1455_s7  ;;  %s30_s30 = int_to_ptr.vmem [resolvable:$true] %s29_s30 }
  0x15   :  { %p1459_p9 = scmp.lt.u32.totalorder %s1455_s7, %s1712_s1 }
  0x17   :  { %p1461_p10 = pnand %p1459_p9, %p1456_p8 }
  0x19   :  { %1464 = shalt.err (!%p1461_p10)
}
  0x1a   :  { %s1465_s12 = scalar_lea.vmem %s30_s30, 1024  ;;  %p1470_p12 = scmp.lt.s32.totalorder %s30_s30, %s30_s30 }
  0x1b   :  { %p1466_p11 = scmp.ne.s32.totalorder %s30_s30, %s1465_s12  ;;  %p1471_p13 = scmp.lt.s32.totalorder %s1465_s12, %s1465_s12 }
  0x1d   :  { %p1472_p0 = por %p1471_p13, %p1470_p12 }
  0x1f   :  { %p1473_p1 = pnand %p1472_p0, %p1466_p11 }
  0x21   :  { %1476 = shalt.err (!%p1473_p1)
}
  0x22   :  { %35 = dma.hbm_to_vmem [thread:$0]  %s1712_s1, 1024, %s30_s30, [#allocation6], %s1506_s25, %s1506_s25, %s1507_s26  }
  0x23   :  { %1499 = dma.done.wait [#allocation3], 4096  }
  0x24   :  { %1500 = vsyncadd [#allocation3], 4294963200 }
  0x25   :  { %1501 = dma.done.wait [#allocation6], 1024  }
  0x26   :  { %1502 = vsyncadd [#allocation6], 4294966272  ;;  %v1393_v0 = vld [vmem:[#allocation5] sm:$0xff]   ;;  %v1394_v1 = vld [vmem:[#allocation5 + $0x8] sm:$0xff]  }
  0x27   :  { %1289 = vmatprep.subr.bf16.mxu0 %v1393_v0  ;;  %1369 = vmatprep.subr.bf16.mxu1 %v1393_v0  ;;  %v1395_v2 = vld [vmem:[#allocation5 + $0x10] sm:$0xff]   ;;  %v1396_v3 = vld [vmem:[#allocation5 + $0x18] sm:$0xff]   ;;  %v1401_v4 = vld [vmem:[#allocation2] sm:$0xff]  }
  0x28   :  { %1290 = vmatpush3.bf16.msra.mxu0 %v1393_v0  ;;  %1377 = vmatpush3.bf16.msra.mxu1 %v1393_v0  ;;  %v1402_v5 = vld [vmem:[#allocation2 + $0x80] sm:$0xff]   ;;  %v1398_v7 = vld [vmem:[#allocation5 + $0x28] sm:$0xff]   ;;  %v1399_v8 = vld [vmem:[#allocation5 + $0x30] sm:$0xff]  }
  0x29   :  { %1291 = vmatprep.subr.bf16.mxu0 %v1394_v1  ;;  %1370 = vmatprep.subr.bf16.mxu1 %v1394_v1  ;;  %v1397_v6 = vld [vmem:[#allocation5 + $0x20] sm:$0xff]   ;;  %v1400_v9 = vld [vmem:[#allocation5 + $0x38] sm:$0xff]   ;;  %v1403_v10 = vld [vmem:[#allocation2 + $0x8] sm:$0xff]  }
  0x2a   :  { %1305 = vmatprep.mubr.bf16.mxu0 %v1401_v4  ;;  %1337 = vmatprep.mubr.bf16.mxu1 %v1402_v5  ;;  %v1404_v11 = vld [vmem:[#allocation2 + $0x88] sm:$0xff]   ;;  %v1405_v12 = vld [vmem:[#allocation2 + $0x10] sm:$0xff]   ;;  %v1407_v14 = vld [vmem:[#allocation2 + $0x18] sm:$0xff]  }
  0x2b   :  { %v1406_v13 = vld [vmem:[#allocation2 + $0x90] sm:$0xff]   ;;  %v1408_v15 = vld [vmem:[#allocation2 + $0x98] sm:$0xff]   ;;  %v1409_v16 = vld [vmem:[#allocation2 + $0x20] sm:$0xff]  }
  0x2c   :  { %1292 = vmatpush3.bf16.msra.mxu0 %v1394_v1  ;;  %1378 = vmatpush3.bf16.msra.mxu1 %v1394_v1  ;;  %v1410_v17 = vld [vmem:[#allocation2 + $0xa0] sm:$0xff]   ;;  %v1411_v18 = vld [vmem:[#allocation2 + $0x28] sm:$0xff]   ;;  %v1413_v20 = vld [vmem:[#allocation2 + $0x30] sm:$0xff]  }
  0x2d   :  { %1293 = vmatprep.subr.bf16.mxu0 %v1395_v2  ;;  %1371 = vmatprep.subr.bf16.mxu1 %v1395_v2  ;;  %v1412_v19 = vld [vmem:[#allocation2 + $0xa8] sm:$0xff]   ;;  %v1414_v21 = vld [vmem:[#allocation2 + $0xb0] sm:$0xff]   ;;  %v1415_v22 = vld [vmem:[#allocation2 + $0x38] sm:$0xff]  }
  0x2e   :  { %v1416_v23 = vld [vmem:[#allocation2 + $0xb8] sm:$0xff]   ;;  %v1417_v24 = vld [vmem:[#allocation2 + $0x40] sm:$0xff]   ;;  %v1419_v26 = vld [vmem:[#allocation2 + $0x48] sm:$0xff]  }
  0x2f   :  { %v1418_v25 = vld [vmem:[#allocation2 + $0xc0] sm:$0xff]   ;;  %v1420_v27 = vld [vmem:[#allocation2 + $0xc8] sm:$0xff]   ;;  %v1421_v28 = vld [vmem:[#allocation2 + $0x50] sm:$0xff]  }
  0x30   :  { %1294 = vmatpush3.bf16.msra.mxu0 %v1395_v2  ;;  %1379 = vmatpush3.bf16.msra.mxu1 %v1395_v2  ;;  %v1422_v29 = vld [vmem:[#allocation2 + $0xd0] sm:$0xff]   ;;  %v1423_v30 = vld [vmem:[#allocation2 + $0x58] sm:$0xff]   ;;  %v1425_v32 = vld [vmem:[#allocation2 + $0x60] sm:$0xff]  }
  0x31   :  { %1295 = vmatprep.subr.bf16.mxu0 %v1396_v3  ;;  %1372 = vmatprep.subr.bf16.mxu1 %v1396_v3  ;;  %v1424_v31 = vld [vmem:[#allocation2 + $0xd8] sm:$0xff]   ;;  %v1426_v33 = vld [vmem:[#allocation2 + $0xe0] sm:$0xff]   ;;  %v1427_v34 = vld [vmem:[#allocation2 + $0x68] sm:$0xff]  }
  0x32   :  { %v1428_v35 = vld [vmem:[#allocation2 + $0xe8] sm:$0xff]   ;;  %v1429_v36 = vld [vmem:[#allocation2 + $0x70] sm:$0xff]   ;;  %v1431_v38 = vld [vmem:[#allocation2 + $0x78] sm:$0xff]  }
  0x33   :  { %v1430_v37 = vld [vmem:[#allocation2 + $0xf0] sm:$0xff]   ;;  %v1432_v39 = vld [vmem:[#allocation2 + $0xf8] sm:$0xff]   ;;  %v1564_v41 = vld [vmem:[%s1713_s2] ss:$0 sm:$0xff]  ;;  %s1509_s2 = smov [#allocation7]  }
  0x34   :  { %1296 = vmatpush3.bf16.msra.mxu0 %v1396_v3  ;;  %1380 = vmatpush3.bf16.msra.mxu1 %v1396_v3  ;;  %v1569_v45 = vld [vmem:[%s1714_s3] ss:$0 sm:$0xff]  ;;  %s1194_s3 = sshll.u32 %s1509_s2, 4  ;;  %s1195_s3 = int_to_ptr.vmem [resolvable:$true] %s1194_s3 }
  0x35   :  { %1297 = vmatprep.subr.bf16.mxu0 %v1397_v6  ;;  %1373 = vmatprep.subr.bf16.mxu1 %v1397_v6  ;;  %s1477_s17 = scalar_lea.vmem %s1195_s3, 8192  ;;  %p1482_p3 = scmp.lt.s32.totalorder %s1195_s3, %s1195_s3 }
  0x36   :  { %p1478_p2 = scmp.ne.s32.totalorder %s1195_s3, %s1477_s17  ;;  %p1483_p4 = scmp.lt.s32.totalorder %s1477_s17, %s1477_s17 }
  0x38   :  { %1298 = vmatpush3.bf16.msra.mxu0 %v1397_v6  ;;  %1381 = vmatpush3.bf16.msra.mxu1 %v1397_v6  ;;  %p1484_p5 = por %p1483_p4, %p1482_p3 }
  0x39   :  { %1299 = vmatprep.subr.bf16.mxu0 %v1398_v7  ;;  %1374 = vmatprep.subr.bf16.mxu1 %v1398_v7 }
  0x3a   :  { %p1485_p6 = pnand %p1484_p5, %p1478_p2 }
  0x3c   :  { %1300 = vmatpush3.bf16.msra.mxu0 %v1398_v7  ;;  %1382 = vmatpush3.bf16.msra.mxu1 %v1398_v7 }
  0x3d   :  { %1301 = vmatprep.subr.bf16.mxu0 %v1399_v8  ;;  %1375 = vmatprep.subr.bf16.mxu1 %v1399_v8 }
  0x40   :  { %1302 = vmatpush3.bf16.msra.mxu0 %v1399_v8  ;;  %1383 = vmatpush3.bf16.msra.mxu1 %v1399_v8 }
  0x41   :  { %1303 = vmatprep.subr.bf16.mxu0 %v1400_v9  ;;  %1376 = vmatprep.subr.bf16.mxu1 %v1400_v9 }
  0x44   :  { %1304 = vmatpush3.bf16.msra.mxu0 %v1400_v9  ;;  %1384 = vmatpush3.bf16.msra.mxu1 %v1400_v9 }
  0x47   :  { %1306 = vmatmul.mubr.bf16.vlgmr.msra.gmra.mrb[0].mxu0 %v1403_v10  ;;  %1338 = vmatmul.mubr.bf16.vlgmr.msra.gmra.mrb[0].mxu1 %v1404_v11 }
  0x48   :  { %1309 = vmatprep.mubr.bf16.mxu0 %v1405_v12  ;;  %1341 = vmatprep.mubr.bf16.mxu1 %v1406_v13 }
  0x4f   :  { %1310 = vmatmul.mubr.bf16.gmra.mrb[4].mxu0 %v1407_v14  ;;  %1342 = vmatmul.mubr.bf16.gmra.mrb[4].mxu1 %v1408_v15 }
  0x50   :  { %1313 = vmatprep.mubr.bf16.mxu0 %v1409_v16  ;;  %1345 = vmatprep.mubr.bf16.mxu1 %v1410_v17 }
  0x57   :  { %1314 = vmatmul.mubr.bf16.gmra.mrb[8].mxu0 %v1411_v18  ;;  %1346 = vmatmul.mubr.bf16.gmra.mrb[8].mxu1 %v1412_v19 }
  0x58   :  { %1317 = vmatprep.mubr.bf16.mxu0 %v1413_v20  ;;  %1349 = vmatprep.mubr.bf16.mxu1 %v1414_v21 }
  0x5f   :  { %1318 = vmatmul.mubr.bf16.gmra.mrb[12].mxu0 %v1415_v22  ;;  %1350 = vmatmul.mubr.bf16.gmra.mrb[12].mxu1 %v1416_v23 }
  0x60   :  { %1321 = vmatprep.mubr.bf16.mxu0 %v1417_v24  ;;  %1353 = vmatprep.mubr.bf16.mxu1 %v1418_v25 }
  0x67   :  { %1322 = vmatmul.mubr.bf16.gmra.mrb[16].mxu0 %v1419_v26  ;;  %1354 = vmatmul.mubr.bf16.gmra.mrb[16].mxu1 %v1420_v27 }
  0x68   :  { %1325 = vmatprep.mubr.bf16.mxu0 %v1421_v28  ;;  %1357 = vmatprep.mubr.bf16.mxu1 %v1422_v29 }
  0x6f   :  { %1326 = vmatmul.mubr.bf16.gmra.mrb[20].mxu0 %v1423_v30  ;;  %1358 = vmatmul.mubr.bf16.gmra.mrb[20].mxu1 %v1424_v31 }
  0x70   :  { %1329 = vmatprep.mubr.bf16.mxu0 %v1425_v32  ;;  %1361 = vmatprep.mubr.bf16.mxu1 %v1426_v33 }
  0x77   :  { %1330 = vmatmul.mubr.bf16.gmra.mrb[24].mxu0 %v1427_v34  ;;  %1362 = vmatmul.mubr.bf16.gmra.mrb[24].mxu1 %v1428_v35 }
  0x78   :  { %1333 = vmatprep.mubr.bf16.mxu0 %v1429_v36  ;;  %1365 = vmatprep.mubr.bf16.mxu1 %v1430_v37 }
  0x7f   :  { %1334 = vmatmul.mubr.bf16.gmra.mrb[28].mxu0 %v1431_v38  ;;  %1366 = vmatmul.mubr.bf16.gmra.mrb[28].mxu1 %v1432_v39 }
 0x11a   :  { %v1307_v40 = vpop.f32.mrb[0].mxu0  ;;  %v1339_v42 = vpop.f32.mrb[0].mxu1 }
 0x11b   :  { %v533_v43 = vpop.f32.mrb[1].mxu0  ;;  %v661_v44 = vpop.f32.mrb[1].mxu1  ;;  %v992_v48 = vmul.f32 %v1307_v40, %v1564_v41  ;;  %v1024_v49 = vmul.f32 %v1339_v42, %v1564_v41 }
 0x11c   :  { %v1308_v46 = vpop.f32.mrb[2].mxu0  ;;  %v1340_v47 = vpop.f32.mrb[2].mxu1  ;;  %v990_v52 = vmul.f32 %v1564_v41, %v533_v43  ;;  %v1022_v53 = vmul.f32 %v1564_v41, %v661_v44 }
 0x11d   :  { %v536_v50 = vpop.f32.mrb[3].mxu0  ;;  %v664_v51 = vpop.f32.mrb[3].mxu1  ;;  %v1063_v54 = vadd.f32 %v1569_v45, %v992_v48  ;;  %v1095_v55 = vadd.f32 %v1569_v45, %v1024_v49  ;;  %v993_v56 = vmul.f32 %v1308_v46, %v1564_v41  ;;  %v1025_v57 = vmul.f32 %v1340_v47, %v1564_v41 }
 0x11e   :  { %v1061_v58 = vadd.f32 %v1569_v45, %v990_v52  ;;  %v1093_v59 = vadd.f32 %v1569_v45, %v1022_v53  ;;  %v991_v60 = vmul.f32 %v1564_v41, %v536_v50  ;;  %v1023_v61 = vmul.f32 %v1564_v41, %v664_v51 }
 0x11f   :  { %1127 = vst [vmem:[#allocation7 + $0x10] sm:$0xff] %v1063_v54  ;;  %1159 = vst [vmem:[#allocation7 + $0x110] sm:$0xff] %v1095_v55  ;;  %v1064_v62 = vadd.f32 %v1569_v45, %v993_v56  ;;  %v1096_v63 = vadd.f32 %v1569_v45, %v1025_v57 }
 0x120   :  { %1125 = vst [vmem:[#allocation7] sm:$0xff] %v1061_v58  ;;  %1157 = vst [vmem:[#allocation7 + $0x100] sm:$0xff] %v1093_v59  ;;  %v1062_v0 = vadd.f32 %v1569_v45, %v991_v60  ;;  %v1094_v1 = vadd.f32 %v1569_v45, %v1023_v61 }
 0x121   :  { %1128 = vst [vmem:[#allocation7 + $0x18] sm:$0xff] %v1064_v62  ;;  %1160 = vst [vmem:[#allocation7 + $0x118] sm:$0xff] %v1096_v63 }
 0x122   :  { %v1311_v2 = vpop.f32.mrb[4].mxu0  ;;  %v1343_v3 = vpop.f32.mrb[4].mxu1  ;;  %1126 = vst [vmem:[#allocation7 + $0x8] sm:$0xff] %v1062_v0  ;;  %1158 = vst [vmem:[#allocation7 + $0x108] sm:$0xff] %v1094_v1 }
 0x123   :  { %v549_v4 = vpop.f32.mrb[5].mxu0  ;;  %v677_v5 = vpop.f32.mrb[5].mxu1  ;;  %v996_v8 = vmul.f32 %v1311_v2, %v1564_v41  ;;  %v1028_v9 = vmul.f32 %v1343_v3, %v1564_v41 }
 0x124   :  { %v1312_v6 = vpop.f32.mrb[6].mxu0  ;;  %v1344_v7 = vpop.f32.mrb[6].mxu1  ;;  %v994_v12 = vmul.f32 %v1564_v41, %v549_v4  ;;  %v1026_v13 = vmul.f32 %v1564_v41, %v677_v5 }
 0x125   :  { %v552_v10 = vpop.f32.mrb[7].mxu0  ;;  %v680_v11 = vpop.f32.mrb[7].mxu1  ;;  %v1067_v14 = vadd.f32 %v1569_v45, %v996_v8  ;;  %v1099_v15 = vadd.f32 %v1569_v45, %v1028_v9  ;;  %v997_v16 = vmul.f32 %v1312_v6, %v1564_v41  ;;  %v1029_v17 = vmul.f32 %v1344_v7, %v1564_v41 }
 0x126   :  { %v1065_v18 = vadd.f32 %v1569_v45, %v994_v12  ;;  %v1097_v19 = vadd.f32 %v1569_v45, %v1026_v13  ;;  %v995_v20 = vmul.f32 %v1564_v41, %v552_v10  ;;  %v1027_v21 = vmul.f32 %v1564_v41, %v680_v11 }
 0x127   :  { %1131 = vst [vmem:[#allocation7 + $0x30] sm:$0xff] %v1067_v14  ;;  %1163 = vst [vmem:[#allocation7 + $0x130] sm:$0xff] %v1099_v15  ;;  %v1068_v22 = vadd.f32 %v1569_v45, %v997_v16  ;;  %v1100_v23 = vadd.f32 %v1569_v45, %v1029_v17 }
 0x128   :  { %1129 = vst [vmem:[#allocation7 + $0x20] sm:$0xff] %v1065_v18  ;;  %1161 = vst [vmem:[#allocation7 + $0x120] sm:$0xff] %v1097_v19  ;;  %v1066_v24 = vadd.f32 %v1569_v45, %v995_v20  ;;  %v1098_v25 = vadd.f32 %v1569_v45, %v1027_v21 }
 0x129   :  { %1132 = vst [vmem:[#allocation7 + $0x38] sm:$0xff] %v1068_v22  ;;  %1164 = vst [vmem:[#allocation7 + $0x138] sm:$0xff] %v1100_v23 }
 0x12a   :  { %v1315_v26 = vpop.f32.mrb[8].mxu0  ;;  %v1347_v27 = vpop.f32.mrb[8].mxu1  ;;  %1130 = vst [vmem:[#allocation7 + $0x28] sm:$0xff] %v1066_v24  ;;  %1162 = vst [vmem:[#allocation7 + $0x128] sm:$0xff] %v1098_v25 }
 0x12b   :  { %v565_v28 = vpop.f32.mrb[9].mxu0  ;;  %v693_v29 = vpop.f32.mrb[9].mxu1  ;;  %v1000_v32 = vmul.f32 %v1315_v26, %v1564_v41  ;;  %v1032_v33 = vmul.f32 %v1347_v27, %v1564_v41 }
 0x12c   :  { %v1316_v30 = vpop.f32.mrb[10].mxu0  ;;  %v1348_v31 = vpop.f32.mrb[10].mxu1  ;;  %v998_v36 = vmul.f32 %v1564_v41, %v565_v28  ;;  %v1030_v37 = vmul.f32 %v1564_v41, %v693_v29 }
 0x12d   :  { %v568_v34 = vpop.f32.mrb[11].mxu0  ;;  %v696_v35 = vpop.f32.mrb[11].mxu1  ;;  %v1071_v38 = vadd.f32 %v1569_v45, %v1000_v32  ;;  %v1103_v39 = vadd.f32 %v1569_v45, %v1032_v33  ;;  %v1001_v40 = vmul.f32 %v1316_v30, %v1564_v41  ;;  %v1033_v42 = vmul.f32 %v1348_v31, %v1564_v41 }
 0x12e   :  { %v1069_v43 = vadd.f32 %v1569_v45, %v998_v36  ;;  %v1101_v44 = vadd.f32 %v1569_v45, %v1030_v37  ;;  %v999_v46 = vmul.f32 %v1564_v41, %v568_v34  ;;  %v1031_v47 = vmul.f32 %v1564_v41, %v696_v35 }
 0x12f   :  { %1135 = vst [vmem:[#allocation7 + $0x50] sm:$0xff] %v1071_v38  ;;  %1167 = vst [vmem:[#allocation7 + $0x150] sm:$0xff] %v1103_v39  ;;  %v1072_v48 = vadd.f32 %v1569_v45, %v1001_v40  ;;  %v1104_v49 = vadd.f32 %v1569_v45, %v1033_v42 }
 0x130   :  { %1133 = vst [vmem:[#allocation7 + $0x40] sm:$0xff] %v1069_v43  ;;  %1165 = vst [vmem:[#allocation7 + $0x140] sm:$0xff] %v1101_v44  ;;  %v1070_v50 = vadd.f32 %v1569_v45, %v999_v46  ;;  %v1102_v51 = vadd.f32 %v1569_v45, %v1031_v47 }
 0x131   :  { %1136 = vst [vmem:[#allocation7 + $0x58] sm:$0xff] %v1072_v48  ;;  %1168 = vst [vmem:[#allocation7 + $0x158] sm:$0xff] %v1104_v49 }
 0x132   :  { %v1319_v52 = vpop.f32.mrb[12].mxu0  ;;  %v1351_v53 = vpop.f32.mrb[12].mxu1  ;;  %1134 = vst [vmem:[#allocation7 + $0x48] sm:$0xff] %v1070_v50  ;;  %1166 = vst [vmem:[#allocation7 + $0x148] sm:$0xff] %v1102_v51 }
 0x133   :  { %v581_v54 = vpop.f32.mrb[13].mxu0  ;;  %v709_v55 = vpop.f32.mrb[13].mxu1  ;;  %v1004_v58 = vmul.f32 %v1319_v52, %v1564_v41  ;;  %v1036_v59 = vmul.f32 %v1351_v53, %v1564_v41 }
 0x134   :  { %v1320_v56 = vpop.f32.mrb[14].mxu0  ;;  %v1352_v57 = vpop.f32.mrb[14].mxu1  ;;  %v1002_v62 = vmul.f32 %v1564_v41, %v581_v54  ;;  %v1034_v63 = vmul.f32 %v1564_v41, %v709_v55 }
 0x135   :  { %v584_v60 = vpop.f32.mrb[15].mxu0  ;;  %v712_v61 = vpop.f32.mrb[15].mxu1  ;;  %v1075_v0 = vadd.f32 %v1569_v45, %v1004_v58  ;;  %v1107_v1 = vadd.f32 %v1569_v45, %v1036_v59  ;;  %v1005_v2 = vmul.f32 %v1320_v56, %v1564_v41  ;;  %v1037_v3 = vmul.f32 %v1352_v57, %v1564_v41 }
 0x136   :  { %v1073_v4 = vadd.f32 %v1569_v45, %v1002_v62  ;;  %v1105_v5 = vadd.f32 %v1569_v45, %v1034_v63  ;;  %v1003_v6 = vmul.f32 %v1564_v41, %v584_v60  ;;  %v1035_v7 = vmul.f32 %v1564_v41, %v712_v61 }
 0x137   :  { %1139 = vst [vmem:[#allocation7 + $0x70] sm:$0xff] %v1075_v0  ;;  %1171 = vst [vmem:[#allocation7 + $0x170] sm:$0xff] %v1107_v1  ;;  %v1076_v8 = vadd.f32 %v1569_v45, %v1005_v2  ;;  %v1108_v9 = vadd.f32 %v1569_v45, %v1037_v3 }
 0x138   :  { %1137 = vst [vmem:[#allocation7 + $0x60] sm:$0xff] %v1073_v4  ;;  %1169 = vst [vmem:[#allocation7 + $0x160] sm:$0xff] %v1105_v5  ;;  %v1074_v10 = vadd.f32 %v1569_v45, %v1003_v6  ;;  %v1106_v11 = vadd.f32 %v1569_v45, %v1035_v7 }
 0x139   :  { %1140 = vst [vmem:[#allocation7 + $0x78] sm:$0xff] %v1076_v8  ;;  %1172 = vst [vmem:[#allocation7 + $0x178] sm:$0xff] %v1108_v9 }
 0x13a   :  { %v1323_v12 = vpop.f32.mrb[16].mxu0  ;;  %v1355_v13 = vpop.f32.mrb[16].mxu1  ;;  %1138 = vst [vmem:[#allocation7 + $0x68] sm:$0xff] %v1074_v10  ;;  %1170 = vst [vmem:[#allocation7 + $0x168] sm:$0xff] %v1106_v11 }
 0x13b   :  { %v597_v14 = vpop.f32.mrb[17].mxu0  ;;  %v725_v15 = vpop.f32.mrb[17].mxu1  ;;  %v1008_v18 = vmul.f32 %v1323_v12, %v1564_v41  ;;  %v1040_v19 = vmul.f32 %v1355_v13, %v1564_v41 }
 0x13c   :  { %v1324_v16 = vpop.f32.mrb[18].mxu0  ;;  %v1356_v17 = vpop.f32.mrb[18].mxu1  ;;  %v1006_v22 = vmul.f32 %v1564_v41, %v597_v14  ;;  %v1038_v23 = vmul.f32 %v1564_v41, %v725_v15 }
 0x13d   :  { %v600_v20 = vpop.f32.mrb[19].mxu0  ;;  %v728_v21 = vpop.f32.mrb[19].mxu1  ;;  %v1079_v24 = vadd.f32 %v1569_v45, %v1008_v18  ;;  %v1111_v25 = vadd.f32 %v1569_v45, %v1040_v19  ;;  %v1009_v26 = vmul.f32 %v1324_v16, %v1564_v41  ;;  %v1041_v27 = vmul.f32 %v1356_v17, %v1564_v41 }
 0x13e   :  { %v1077_v28 = vadd.f32 %v1569_v45, %v1006_v22  ;;  %v1109_v29 = vadd.f32 %v1569_v45, %v1038_v23  ;;  %v1007_v30 = vmul.f32 %v1564_v41, %v600_v20  ;;  %v1039_v31 = vmul.f32 %v1564_v41, %v728_v21 }
 0x13f   :  { %1143 = vst [vmem:[#allocation7 + $0x90] sm:$0xff] %v1079_v24  ;;  %1175 = vst [vmem:[#allocation7 + $0x190] sm:$0xff] %v1111_v25  ;;  %v1080_v32 = vadd.f32 %v1569_v45, %v1009_v26  ;;  %v1112_v33 = vadd.f32 %v1569_v45, %v1041_v27 }
 0x140   :  { %1141 = vst [vmem:[#allocation7 + $0x80] sm:$0xff] %v1077_v28  ;;  %1173 = vst [vmem:[#allocation7 + $0x180] sm:$0xff] %v1109_v29  ;;  %v1078_v34 = vadd.f32 %v1569_v45, %v1007_v30  ;;  %v1110_v35 = vadd.f32 %v1569_v45, %v1039_v31 }
 0x141   :  { %1144 = vst [vmem:[#allocation7 + $0x98] sm:$0xff] %v1080_v32  ;;  %1176 = vst [vmem:[#allocation7 + $0x198] sm:$0xff] %v1112_v33 }
 0x142   :  { %v1327_v36 = vpop.f32.mrb[20].mxu0  ;;  %v1359_v37 = vpop.f32.mrb[20].mxu1  ;;  %1142 = vst [vmem:[#allocation7 + $0x88] sm:$0xff] %v1078_v34  ;;  %1174 = vst [vmem:[#allocation7 + $0x188] sm:$0xff] %v1110_v35 }
 0x143   :  { %v613_v38 = vpop.f32.mrb[21].mxu0  ;;  %v741_v39 = vpop.f32.mrb[21].mxu1  ;;  %v1012_v43 = vmul.f32 %v1327_v36, %v1564_v41  ;;  %v1044_v44 = vmul.f32 %v1359_v37, %v1564_v41 }
 0x144   :  { %v1328_v40 = vpop.f32.mrb[22].mxu0  ;;  %v1360_v42 = vpop.f32.mrb[22].mxu1  ;;  %v1010_v48 = vmul.f32 %v1564_v41, %v613_v38  ;;  %v1042_v49 = vmul.f32 %v1564_v41, %v741_v39 }
 0x145   :  { %v616_v46 = vpop.f32.mrb[23].mxu0  ;;  %v744_v47 = vpop.f32.mrb[23].mxu1  ;;  %v1083_v50 = vadd.f32 %v1569_v45, %v1012_v43  ;;  %v1115_v51 = vadd.f32 %v1569_v45, %v1044_v44  ;;  %v1013_v52 = vmul.f32 %v1328_v40, %v1564_v41  ;;  %v1045_v53 = vmul.f32 %v1360_v42, %v1564_v41 }
 0x146   :  { %v1081_v54 = vadd.f32 %v1569_v45, %v1010_v48  ;;  %v1113_v55 = vadd.f32 %v1569_v45, %v1042_v49  ;;  %v1011_v56 = vmul.f32 %v1564_v41, %v616_v46  ;;  %v1043_v57 = vmul.f32 %v1564_v41, %v744_v47 }
 0x147   :  { %1147 = vst [vmem:[#allocation7 + $0xb0] sm:$0xff] %v1083_v50  ;;  %1179 = vst [vmem:[#allocation7 + $0x1b0] sm:$0xff] %v1115_v51  ;;  %v1084_v58 = vadd.f32 %v1569_v45, %v1013_v52  ;;  %v1116_v59 = vadd.f32 %v1569_v45, %v1045_v53 }
 0x148   :  { %1145 = vst [vmem:[#allocation7 + $0xa0] sm:$0xff] %v1081_v54  ;;  %1177 = vst [vmem:[#allocation7 + $0x1a0] sm:$0xff] %v1113_v55  ;;  %v1082_v60 = vadd.f32 %v1569_v45, %v1011_v56  ;;  %v1114_v61 = vadd.f32 %v1569_v45, %v1043_v57 }
 0x149   :  { %1148 = vst [vmem:[#allocation7 + $0xb8] sm:$0xff] %v1084_v58  ;;  %1180 = vst [vmem:[#allocation7 + $0x1b8] sm:$0xff] %v1116_v59 }
 0x14a   :  { %v1331_v62 = vpop.f32.mrb[24].mxu0  ;;  %v1363_v63 = vpop.f32.mrb[24].mxu1  ;;  %1146 = vst [vmem:[#allocation7 + $0xa8] sm:$0xff] %v1082_v60  ;;  %1178 = vst [vmem:[#allocation7 + $0x1a8] sm:$0xff] %v1114_v61 }
 0x14b   :  { %v629_v0 = vpop.f32.mrb[25].mxu0  ;;  %v757_v1 = vpop.f32.mrb[25].mxu1  ;;  %v1016_v4 = vmul.f32 %v1331_v62, %v1564_v41  ;;  %v1048_v5 = vmul.f32 %v1363_v63, %v1564_v41 }
 0x14c   :  { %v1332_v2 = vpop.f32.mrb[26].mxu0  ;;  %v1364_v3 = vpop.f32.mrb[26].mxu1  ;;  %v1014_v8 = vmul.f32 %v1564_v41, %v629_v0  ;;  %v1046_v9 = vmul.f32 %v1564_v41, %v757_v1 }
 0x14d   :  { %v632_v6 = vpop.f32.mrb[27].mxu0  ;;  %v760_v7 = vpop.f32.mrb[27].mxu1  ;;  %v1087_v10 = vadd.f32 %v1569_v45, %v1016_v4  ;;  %v1119_v11 = vadd.f32 %v1569_v45, %v1048_v5  ;;  %v1017_v12 = vmul.f32 %v1332_v2, %v1564_v41  ;;  %v1049_v13 = vmul.f32 %v1364_v3, %v1564_v41 }
 0x14e   :  { %v1085_v14 = vadd.f32 %v1569_v45, %v1014_v8  ;;  %v1117_v15 = vadd.f32 %v1569_v45, %v1046_v9  ;;  %v1015_v16 = vmul.f32 %v1564_v41, %v632_v6  ;;  %v1047_v17 = vmul.f32 %v1564_v41, %v760_v7 }
 0x14f   :  { %1151 = vst [vmem:[#allocation7 + $0xd0] sm:$0xff] %v1087_v10  ;;  %1183 = vst [vmem:[#allocation7 + $0x1d0] sm:$0xff] %v1119_v11  ;;  %v1088_v18 = vadd.f32 %v1569_v45, %v1017_v12  ;;  %v1120_v19 = vadd.f32 %v1569_v45, %v1049_v13 }
 0x150   :  { %1149 = vst [vmem:[#allocation7 + $0xc0] sm:$0xff] %v1085_v14  ;;  %1181 = vst [vmem:[#allocation7 + $0x1c0] sm:$0xff] %v1117_v15  ;;  %v1086_v20 = vadd.f32 %v1569_v45, %v1015_v16  ;;  %v1118_v21 = vadd.f32 %v1569_v45, %v1047_v17 }
 0x151   :  { %1152 = vst [vmem:[#allocation7 + $0xd8] sm:$0xff] %v1088_v18  ;;  %1184 = vst [vmem:[#allocation7 + $0x1d8] sm:$0xff] %v1120_v19 }
 0x152   :  { %v1335_v22 = vpop.f32.mrb[28].mxu0  ;;  %v1367_v23 = vpop.f32.mrb[28].mxu1  ;;  %1150 = vst [vmem:[#allocation7 + $0xc8] sm:$0xff] %v1086_v20  ;;  %1182 = vst [vmem:[#allocation7 + $0x1c8] sm:$0xff] %v1118_v21 }
 0x153   :  { %v645_v24 = vpop.f32.mrb[29].mxu0  ;;  %v773_v25 = vpop.f32.mrb[29].mxu1  ;;  %v1020_v28 = vmul.f32 %v1335_v22, %v1564_v41  ;;  %v1052_v29 = vmul.f32 %v1367_v23, %v1564_v41 }
 0x154   :  { %v1336_v26 = vpop.f32.mrb[30].mxu0  ;;  %v1368_v27 = vpop.f32.mrb[30].mxu1  ;;  %v1018_v32 = vmul.f32 %v1564_v41, %v645_v24  ;;  %v1050_v33 = vmul.f32 %v1564_v41, %v773_v25 }
 0x155   :  { %v648_v30 = vpop.f32.mrb[31].mxu0  ;;  %v776_v31 = vpop.f32.mrb[31].mxu1  ;;  %v1091_v34 = vadd.f32 %v1569_v45, %v1020_v28  ;;  %v1123_v35 = vadd.f32 %v1569_v45, %v1052_v29  ;;  %v1021_v36 = vmul.f32 %v1336_v26, %v1564_v41  ;;  %v1053_v37 = vmul.f32 %v1368_v27, %v1564_v41 }
 0x156   :  { %v1089_v38 = vadd.f32 %v1569_v45, %v1018_v32  ;;  %v1121_v39 = vadd.f32 %v1569_v45, %v1050_v33  ;;  %v1019_v40 = vmul.f32 %v1564_v41, %v648_v30  ;;  %v1051_v42 = vmul.f32 %v1564_v41, %v776_v31 }
 0x157   :  { %1155 = vst [vmem:[#allocation7 + $0xf0] sm:$0xff] %v1091_v34  ;;  %1187 = vst [vmem:[#allocation7 + $0x1f0] sm:$0xff] %v1123_v35  ;;  %v1092_v43 = vadd.f32 %v1569_v45, %v1021_v36  ;;  %v1124_v44 = vadd.f32 %v1569_v45, %v1053_v37 }
 0x158   :  { %1153 = vst [vmem:[#allocation7 + $0xe0] sm:$0xff] %v1089_v38  ;;  %1185 = vst [vmem:[#allocation7 + $0x1e0] sm:$0xff] %v1121_v39  ;;  %v1090_v46 = vadd.f32 %v1569_v45, %v1019_v40  ;;  %v1122_v47 = vadd.f32 %v1569_v45, %v1051_v42 }
 0x159   :  { %1156 = vst [vmem:[#allocation7 + $0xf8] sm:$0xff] %v1092_v43  ;;  %1188 = vst [vmem:[#allocation7 + $0x1f8] sm:$0xff] %v1124_v44 }
 0x15a   :  { %1154 = vst [vmem:[#allocation7 + $0xe8] sm:$0xff] %v1090_v46  ;;  %1186 = vst [vmem:[#allocation7 + $0x1e8] sm:$0xff] %v1122_v47 }
 0x15b   :  { %1488 = shalt.err (!%p1485_p6)
}
 0x15c   :  { %s1489_s20 = scalar_lea.hbm %s1715_s4, 8192 }
 0x15d   :  { %p1490_p7 = scmp.ne.s32.totalorder %s1715_s4, %s1489_s20  ;;  %p1493_p8 = scmp.lt.u32.totalorder %s1489_s20, %s1715_s4 }
 0x15f   :  { %p1495_p9 = pnand %p1493_p8, %p1490_p7 }
 0x161   :  { %1498 = shalt.err (!%p1495_p9)
}
 0x162   :  { %s1510_s25 = smov 128   ;;  %s1511_s26 = smov 8  }
 0x163   :  { %1200 = dma.vmem_to_hbm [thread:$0]  %s1195_s3, 8192, %s1715_s4, [#allocation4], %s1510_s25, %s1510_s25, %s1511_s26  }
 0x164   :  { %1503 = dma.done.wait [#allocation4], 8192  }
 0x165   :  { %1504 = vsyncadd [#allocation4], 4294959104 }
 0x166   :  { %1204 = vsyncpa [#allocation3], 1 }
 0x167   :  { %1205 = vsyncpa [#allocation6], 1 }
 0x168   :  { %1206 = vsyncpa [#allocation4], 1 }

</bundles_post_ra>
